<compile_context>
chip_gen: v7x
topology: tpu7x:2x2x1
jax: 0.10.0
libtpu: 0.0.40
codegen_flags: <defaults>
</compile_context>

<pallas_src>
import jax
import jax.numpy as jnp
from jax.experimental import pallas as pl
from jax.experimental.pallas import tpu as pltpu


def _linear_kernel(x_ref, w_ref, b_ref, o_ref):
    # x_ref: (TM, K), w_ref: (K, N), b_ref: (1, N), o_ref: (TM, N)
    acc = jnp.dot(x_ref[...], w_ref[...], preferred_element_type=jnp.float32)
    o_ref[...] = (acc + b_ref[...].astype(jnp.float32)).astype(o_ref.dtype)


def _choose_tm(M, K, N, itemsize,
               tile_budget_bytes=20 << 20):
    """Pick the M-tile so double-buffered x/out tiles + resident weights fit VMEM."""
    # Weight (K, N) and bias (1, N) are grid-invariant but still double-buffered by
    # the default pipeline; charge 2x against the budget.
    resident = 2 * itemsize * (K * N + N)
    budget = max(tile_budget_bytes - resident, 1 << 20)
    # Per row of an M tile: x row (K elems) + out row (N elems), each double-buffered.
    per_row = 2 * itemsize * (K + N)
    tm = budget // per_row
    tm = int(min(tm, 4096))          # per-step overhead is already negligible here
    if tm >= M:
        tm = M                       # single tile: block dim == full dim is always legal
    else:
        tm = max(8, (tm // 8) * 8)   # multiple of 8; Pallas masks the tail tile

    # v7x has 2 TensorCores: make sure there are >=2 grid tiles when M allows it.
    # (On 1-TC chips this only adds one ~0.35us grid step — noise.)
    if tm >= M and M >= 16:
        half = (M + 1) // 2
        tm = max(8, ((half + 7) // 8) * 8)
        tm = min(tm, M)
    return tm


def prepare_linear_params(weight, bias):
    """One-time parameter prep (hoisted out of the per-call forward).

    weight: (output_dim, input_dim) — torch.nn.Linear.weight layout.
    bias:   (output_dim,)
    Returns weight transposed to (input_dim, output_dim) and bias as (1, output_dim).
    """
    return weight.T, bias.reshape(1, -1)


def linear_regression_forward(x, w_t, b_row):
    """Forward of torch.nn.Linear on x.view(-1, input_dim).

    x:     any shape whose total size is divisible by input_dim (row-major flatten).
    w_t:   (input_dim, output_dim)  — pre-transposed weight from prepare_linear_params.
    b_row: (1, output_dim)
    """
    K, N = w_t.shape
    assert x.size % K == 0, "x total size must be divisible by input_dim (torch .view semantics)"
    x2d = x.reshape(-1, K)
    M = x2d.shape[0]

    itemsize = jnp.dtype(x2d.dtype).itemsize
    TM = _choose_tm(M, K, N, itemsize)
    grid = (pl.cdiv(M, TM),)

    bytes_accessed = (itemsize * M * K                       # activations in
                      + jnp.dtype(w_t.dtype).itemsize * K * N  # weights
                      + jnp.dtype(b_row.dtype).itemsize * N    # bias
                      + itemsize * M * N)                      # output

    out = pl.pallas_call(
        _linear_kernel,
        out_shape=jax.ShapeDtypeStruct((M, N), x2d.dtype),
        grid_spec=pltpu.PrefetchScalarGridSpec(
            num_scalar_prefetch=0,
            grid=grid,
            in_specs=[
                pl.BlockSpec((TM, K), lambda i: (i, 0)),   # stream activations over M
                pl.BlockSpec((K, N), lambda i: (0, 0)),    # weights resident in VMEM
                pl.BlockSpec((1, N), lambda i: (0, 0)),    # bias resident in VMEM
            ],
            out_specs=pl.BlockSpec((TM, N), lambda i: (i, 0)),
        ),
        compiler_params=pltpu.CompilerParams(
            dimension_semantics=("parallel",),             # shard M tiles across TCs (v7x)
            vmem_limit_bytes=32 << 20,                     # safe on v5e/v6e/v7x
        ),
        cost_estimate=pl.CostEstimate(
            flops=2 * M * K * N,
            transcendentals=0,
            bytes_accessed=int(bytes_accessed),
        ),
    )(x2d, w_t, b_row)

    return out


if __name__ == "__main__":
    key = jax.random.PRNGKey(0)
    k1, k2, k3 = jax.random.split(key, 3)

    input_dim = 32
    output_dim = 8

    # Parameters with the same shapes as torch.nn.Linear(input_dim, output_dim).
    weight = jax.random.normal(k1, (output_dim, input_dim), dtype=jnp.float32) * 0.1
    bias = jax.random.normal(k2, (output_dim,), dtype=jnp.float32) * 0.1

    # One-time parameter prep (equivalent to doing it at module init).
    w_t, b_row = prepare_linear_params(weight, bias)

    # Example input: (2, 4, 16) -> view(-1, 32) gives (4, 32) rows.
    x = jax.random.normal(k3, (2, 4, 16), dtype=jnp.float32)

    out = linear_regression_forward(x, w_t, b_row)
    out = jax.block_until_ready(out)

    # Reference check in plain JAX.
    ref = x.reshape(-1, input_dim) @ weight.T + bias
    assert out.shape == (4, output_dim), out.shape
    assert jnp.allclose(out, ref, atol=1e-5), "mismatch vs reference"

    print("KERNEL_OK")
</pallas_src>

<mosaic_0001>
module attributes {stable_mosaic.version = 11 : i64} {
  func.func @_linear_kernel(%arg0: i32, %arg1: memref<4x32xf32, #tpu.memory_space<vmem>>, %arg2: memref<32x8xf32, #tpu.memory_space<vmem>>, %arg3: memref<1x8xf32, #tpu.memory_space<vmem>>, %arg4: memref<4x8xf32, #tpu.memory_space<vmem>>) attributes {dimension_semantics = [#tpu.dimension_semantics<parallel>], iteration_bounds = array<i64: 1>, scalar_prefetch = 0 : i64, scratch_operands = 0 : i64, tpu.core_type = #tpu.core_type<tc>, window_params = [{transform_indices = @transform_0, window_bounds = array<i64: 4, 32>}, {pipeline_mode = #tpu.pipeline_mode<synchronous>, transform_indices = @transform_1, window_bounds = array<i64: 32, 8>}, {pipeline_mode = #tpu.pipeline_mode<synchronous>, transform_indices = @transform_2, window_bounds = array<i64: 1, 8>}, {transform_indices = @transform_3, window_bounds = array<i64: 4, 8>}]} {
    %c0 = arith.constant 0 : index
    %c0_0 = arith.constant 0 : index
    %0 = vector.load %arg1[%c0, %c0_0] : memref<4x32xf32, #tpu.memory_space<vmem>>, vector<4x32xf32>
    %c0_1 = arith.constant 0 : index
    %c0_2 = arith.constant 0 : index
    %1 = vector.load %arg2[%c0_1, %c0_2] : memref<32x8xf32, #tpu.memory_space<vmem>>, vector<32x8xf32>
    %cst = arith.constant dense<0.000000e+00> : vector<4x8xf32>
    %2 = tpu.matmul %0, %1, %cst {dimension_numbers = #tpu.dot_dimension_numbers<[1], [0], [0], [1], [0, 0, 1, 1], [], []>} : vector<4x32xf32>, vector<32x8xf32>, vector<4x8xf32> -> vector<4x8xf32>
    %c0_3 = arith.constant 0 : index
    %c0_4 = arith.constant 0 : index
    %3 = vector.load %arg3[%c0_3, %c0_4] : memref<1x8xf32, #tpu.memory_space<vmem>>, vector<1x8xf32>
    %4 = vector.broadcast %3 : vector<1x8xf32> to vector<4x8xf32>
    %5 = arith.addf %2, %4 : vector<4x8xf32>
    %c0_5 = arith.constant 0 : index
    %c0_6 = arith.constant 0 : index
    %6 = vector.load %arg4[%c0_5, %c0_6] : memref<4x8xf32, #tpu.memory_space<vmem>>, vector<4x8xf32>
    tpu.vector_store %arg4[%c0_5, %c0_6], %5 {strides = array<i32>} : memref<4x8xf32, #tpu.memory_space<vmem>>, vector<4x8xf32>,
    return
  }
  func.func @transform_0(%arg0: i32) -> (i32, i32) {
    %c0_i32 = arith.constant 0 : i32
    %c0_i32_0 = arith.constant 0 : i32
    return %arg0, %c0_i32 : i32, i32
  }
  func.func @transform_1(%arg0: i32) -> (i32, i32) {
    %c0_i32 = arith.constant 0 : i32
    %c0_i32_0 = arith.constant 0 : i32
    %c0_i32_1 = arith.constant 0 : i32
    return %c0_i32, %c0_i32_0 : i32, i32
  }
  func.func @transform_2(%arg0: i32) -> (i32, i32) {
    %c0_i32 = arith.constant 0 : i32
    %c0_i32_0 = arith.constant 0 : i32
    %c0_i32_1 = arith.constant 0 : i32
    return %c0_i32, %c0_i32_0 : i32, i32
  }
  func.func @transform_3(%arg0: i32) -> (i32, i32) {
    %c0_i32 = arith.constant 0 : i32
    %c0_i32_0 = arith.constant 0 : i32
    return %arg0, %c0_i32 : i32, i32
  }
}

</mosaic_0001>

<bundles_post_ra>
// kernel: tpu_custom_call.1
= control target key start
LH: loop header
LB: loop body
LE: loop exit
PB: predicated region body
PF: predicated region fallthrough
CT: control target
= control target key end

     0   :  { %v169_v3 = vmov 0.0|0.0   ;;  %vm170_vm0 = vmmov 0   ;;  %v171_v6 = vmov 0.0   ;;  %s223_s0 = inlined_call_operand.vmem [shape: f32[4,32], index: 0, kind: input, shape index: {}]   ;;  %s224_s1 = inlined_call_operand.vmem [shape: f32[32,8], index: 1, kind: input, shape index: {}]   ;;  %s225_s2 = inlined_call_operand.vmem [shape: f32[1,8], index: 2, kind: input, shape index: {}]   ;;  %s226_s3 = inlined_call_operand.hbm [shape: f32[4,8], index: 3, kind: output, shape index: {}]  }
   0x1   :  { %v16_v0 = vld [vmem:[%s224_s1] sm:$0xff]  ;;  %v17_v1 = vld [vmem:[%s224_s1 + $0x8] sm:$0xff]  ;;  %v18_v2 = vld [vmem:[%s224_s1 + $0x10] sm:$0xff]  ;;  %135 = vmatprep.subr.bf16.mxu0 %v169_v3  ;;  %132 = vmatprep.mubr.msk.f32.mxu0 %vm170_vm0, %v171_v6 }
   0x2   :  { %v136_v4 = vpack.c.bf16 %v17_v1, %v16_v0  ;;  %v19_v5 = vld [vmem:[%s224_s1 + $0x18] sm:$0xff] }
   0x3   :  { %8 = vsyncpa [#allocation3], 0  ;;  %v139_v7 = vpack.c.bf16 %v19_v5, %v18_v2  ;;  %v15_v8 = vld [vmem:[%s223_s0] sm:$0xf]  ;;  %vm27_vm1 = vcmask 261120   ;;  %s172_s24 = smov [#allocation2]  }
   0x4   :  { %137 = vmatpush3.bf16.msra.mxu0 %v136_v4  ;;  %v117_v9 = vld [vmem:[%s225_s2] ss:$0 sm:$0xff]  ;;  %s109_s1 = sshll.u32 %s172_s24, 4  ;;  %vm101_vm2 = vcmask 60416   ;;  %s110_s1 = int_to_ptr.vmem [resolvable:$true] %s109_s1 }
   0x5   :  { %138 = vmatprep.subr.bf16.mxu0 %v169_v3  ;;  %s145_s25 = scalar_lea.vmem %s110_s1, 64  ;;  %p150_p1 = scmp.lt.s32.totalorder %s110_s1, %s110_s1 }
   0x6   :  { %p146_p0 = scmp.ne.s32.totalorder %s110_s1, %s145_s25  ;;  %p151_p2 = scmp.lt.s32.totalorder %s145_s25, %s145_s25 }
   0x8   :  { %140 = vmatpush3.bf16.msra.mxu0 %v139_v7  ;;  %p152_p3 = por %p151_p2, %p150_p1 }
   0xa   :  { %p153_p4 = pnand %p152_p3, %p146_p0 }
   0xb   :  { %133 = vmatmul.mubr.msk.f32.vlgmr.msra.gmra.mrb[0].mxu0 %vm27_vm1, %v15_v8 }
  0xde   :  { %v97_v10 = vpop.f32.mrb[0].mxu0 }
  0xdf   :  { %v98_v11 = vadd.f32 %v117_v9, %v97_v10  ;;  %v134_v12 = vpop.f32.mrb[1].mxu0 }
  0xe1   :  { %102 = vst.msk [vmem:[#allocation2] sm:$0xf] %vm101_vm2, %v98_v11 }
  0xe2   :  { %156 = shalt.err (!%p153_p4)
}
  0xe3   :  { %s157_s27 = scalar_lea.hbm %s226_s3, 64 }
  0xe4   :  { %p158_p5 = scmp.ne.s32.totalorder %s226_s3, %s157_s27  ;;  %p161_p6 = scmp.lt.u32.totalorder %s157_s27, %s226_s3 }
  0xe6   :  { %p163_p7 = pnand %p161_p6, %p158_p5 }
  0xe8   :  { %166 = shalt.err (!%p163_p7)
}
  0xe9   :  { %112 = dma.vmem_to_hbm [thread:$0]  %s110_s1, 64, %s226_s3, [#allocation3]  }
  0xea   :  { %167 = dma.done.wait [#allocation3], 64  }
  0xeb   :  { %168 = vsyncadd [#allocation3], 4294967232 }
  0xec   :  { %116 = vsyncpa [#allocation3], 1 }

</bundles_post_ra>
